<compile_context>
chip_gen: v7x
topology: tpu7x:2x2x1
jax: 0.10.0
libtpu: 0.0.40
codegen_flags: <defaults>
</compile_context>

<pallas_src>
import functools

import jax
import jax.numpy as jnp
from jax.experimental import pallas as pl
from jax.experimental.pallas import tpu as pltpu


def _round_up(x, m):
    return ((x + m - 1) // m) * m


def _make_kernel(num_modalities):
    def kernel(ids_ref, ctx_ref, tab_ref, w1_ref, b1_ref, w2_ref, b2_ref,
               out_ref):
        # context_net in transposed space: out^T = W2 @ relu(W1 @ ctx^T + b1) + b2
        h = jnp.dot(w1_ref[...], ctx_ref[...],
                    preferred_element_type=jnp.float32)          # (E, tile_n)
        h = jnp.maximum(h + b1_ref[...], 0.0)                    # bias/ReLU in f32
        out = jnp.dot(w2_ref[...], h.astype(w2_ref.dtype),
                      preferred_element_type=jnp.float32)        # (E, tile_n)
        out = out + b2_ref[...]

        # Modal embedding lookup, in-kernel (no HBM one-hot materialization).
        ids = ids_ref[...]                              # (1, tile_n) int32
        table = tab_ref[...].astype(jnp.float32)        # (E, M), resident

        if num_modalities <= 8:
            # Tiny table: unrolled VPU select chain; the (1, tile_n) lane mask
            # replicates across sublanes for free.
            modal = jnp.zeros_like(out)
            for m in range(num_modalities):
                modal = jnp.where(ids == m, table[:, m:m + 1], modal)
        else:
            # Larger table: one-hot @ table on the MXU, still lane-dense.
            iota = jax.lax.broadcasted_iota(
                jnp.int32, (num_modalities, ids.shape[1]), 0)
            onehot = (ids == iota).astype(jnp.float32)
            modal = jnp.dot(table, onehot,
                            preferred_element_type=jnp.float32)

        out_ref[...] = (out + modal).astype(out_ref.dtype)

    return kernel


@functools.partial(jax.jit, static_argnames=("tile_n", "stream_dtype"))
def context_embedding(modality_ids, context, params, *, tile_n=4096,
                      stream_dtype=jnp.float32):
    """modality_ids: (N,) int, context: (N, ctx_dim) -> (N, E)."""
    table = params["emb_table"]          # (num_modalities, E)  [PyTorch layout]
    w1, b1 = params["w1"], params["b1"]  # (E, ctx_dim), (E, 1) [PyTorch layout]
    w2, b2 = params["w2"], params["b2"]  # (E, E),       (E, 1)

    n, ctx_dim = context.shape
    num_modalities, emb_dim = table.shape

    # Lane tile over N: multiple of 128, and >= 2 grid steps whenever N spans
    # more than one lane tile (so v7x's two TensorCores both engage).
    if n <= 128:
        tile_n = n                                    # single full-extent block
    else:
        half = _round_up(pl.cdiv(n, 2), 128)
        tile_n = max(128, min((tile_n // 128) * 128, half))
    grid = (pl.cdiv(n, tile_n),)

    # Layout plumbing (wrapper-side): N goes to the lane (minor) dimension.
    ids_row = modality_ids.astype(jnp.int32).reshape(1, n)      # (1, N)
    ctx_t = context.T.astype(stream_dtype)                      # (ctx_dim, N)
    tab_t = table.T.astype(stream_dtype)                        # (E, M)
    w1_s = w1.astype(stream_dtype)
    w2_s = w2.astype(stream_dtype)
    b1_f = b1.astype(jnp.float32)
    b2_f = b2.astype(jnp.float32)

    def lane_spec(rows):
        return pl.BlockSpec((rows, tile_n), lambda i: (0, i))

    def resident(shape):
        # Constant block index -> stays in VMEM across grid steps.  (If E/M
        # ever grow large, add pipeline_mode=pl.Buffered(1) to halve their
        # double-buffered VMEM footprint.)
        return pl.BlockSpec(shape, lambda i: (0, 0))

    out_t = pl.pallas_call(
        _make_kernel(num_modalities),
        out_shape=jax.ShapeDtypeStruct((emb_dim, n), stream_dtype),
        grid=grid,
        in_specs=[
            lane_spec(1),              # modality ids   (lane-tiled over N)
            lane_spec(ctx_dim),        # context^T      (lane-tiled over N)
            resident(tab_t.shape),     # embedding table^T (resident)
            resident(w1_s.shape),      # W1              (resident)
            resident(b1_f.shape),      # b1              (resident)
            resident(w2_s.shape),      # W2              (resident)
            resident(b2_f.shape),      # b2              (resident)
        ],
        out_specs=lane_spec(emb_dim),
        compiler_params=pltpu.CompilerParams(
            dimension_semantics=("parallel",)),
    )(ids_row, ctx_t, tab_t, w1_s, b1_f, w2_s, b2_f)

    return out_t.T                     # back to the module's (N, E) layout


def init_params(key, embedding_dim, num_modalities, context_dim):
    """Deterministic synthetic parameters in PyTorch layouts."""
    k0, k1, k2, k3, k4 = jax.random.split(key, 5)
    # nn.Embedding default: N(0, 1)
    emb_table = jax.random.normal(k0, (num_modalities, embedding_dim),
                                  dtype=jnp.float32)
    # nn.Linear default: U(-1/sqrt(fan_in), 1/sqrt(fan_in)); weight stored as
    # (out, in) exactly like PyTorch (used directly in the transposed kernel).
    lim1 = 1.0 / (context_dim ** 0.5)
    w1 = jax.random.uniform(k1, (embedding_dim, context_dim),
                            minval=-lim1, maxval=lim1, dtype=jnp.float32)
    b1 = jax.random.uniform(k2, (embedding_dim, 1),
                            minval=-lim1, maxval=lim1, dtype=jnp.float32)
    lim2 = 1.0 / (embedding_dim ** 0.5)
    w2 = jax.random.uniform(k3, (embedding_dim, embedding_dim),
                            minval=-lim2, maxval=lim2, dtype=jnp.float32)
    b2 = jax.random.uniform(k4, (embedding_dim, 1),
                            minval=-lim2, maxval=lim2, dtype=jnp.float32)
    return dict(emb_table=emb_table, w1=w1, b1=b1, w2=w2, b2=b2)


def _reference(modality_ids, context, params):
    modal = params["emb_table"][modality_ids]
    h = jnp.maximum(context @ params["w1"].T + params["b1"][:, 0], 0.0)
    ctx_emb = h @ params["w2"].T + params["b2"][:, 0]
    return modal + ctx_emb


if __name__ == "__main__":
    embedding_dim = 32
    num_modalities = 4
    context_dim = 8

    key = jax.random.PRNGKey(0)
    kp, kc1, km1, kc2, km2 = jax.random.split(key, 5)

    params = init_params(kp, embedding_dim, num_modalities, context_dim)

    # Case 1: typical tiny EEG channel count (single ragged lane block).
    n1 = 18
    ctx1 = jax.random.normal(kc1, (n1, context_dim), dtype=jnp.float32)
    ids1 = jax.random.randint(km1, (n1,), 0, num_modalities, dtype=jnp.int32)
    out1 = jax.block_until_ready(context_embedding(ids1, ctx1, params))
    ref1 = _reference(ids1, ctx1, params)
    assert out1.shape == (n1, embedding_dim)
    assert jnp.allclose(out1, ref1, atol=1e-5, rtol=1e-5)

    # Case 2: multi-tile ragged grid (N=300 -> tile_n=256, grid=(2,)).
    n2 = 300
    ctx2 = jax.random.normal(kc2, (n2, context_dim), dtype=jnp.float32)
    ids2 = jax.random.randint(km2, (n2,), 0, num_modalities, dtype=jnp.int32)
    out2 = jax.block_until_ready(context_embedding(ids2, ctx2, params))
    ref2 = _reference(ids2, ctx2, params)
    assert out2.shape == (n2, embedding_dim)
    assert jnp.allclose(out2, ref2, atol=1e-5, rtol=1e-5)

    # Case 3: bf16 streaming path (halved HBM traffic, f32 accumulation).
    out_bf = jax.block_until_ready(
        context_embedding(ids2, ctx2, params, stream_dtype=jnp.bfloat16))
    assert out_bf.shape == (n2, embedding_dim)
    assert jnp.allclose(out_bf.astype(jnp.float32), ref2, atol=5e-2, rtol=5e-2)

    print("KERNEL_OK")
</pallas_src>

<mosaic_0001>
module attributes {stable_mosaic.version = 11 : i64} {
  func.func @kernel(%arg0: i32, %arg1: memref<1x18xi32, #tpu.memory_space<vmem>>, %arg2: memref<8x18xf32, #tpu.memory_space<vmem>>, %arg3: memref<32x4xf32, #tpu.memory_space<vmem>>, %arg4: memref<32x8xf32, #tpu.memory_space<vmem>>, %arg5: memref<32x1xf32, #tpu.memory_space<vmem>>, %arg6: memref<32x32xf32, #tpu.memory_space<vmem>>, %arg7: memref<32x1xf32, #tpu.memory_space<vmem>>, %arg8: memref<32x18xf32, #tpu.memory_space<vmem>>) attributes {dimension_semantics = [#tpu.dimension_semantics<parallel>], iteration_bounds = array<i64: 1>, scalar_prefetch = 0 : i64, scratch_operands = 0 : i64, tpu.core_type = #tpu.core_type<tc>, window_params = [{transform_indices = @transform_0, window_bounds = array<i64: 1, 18>}, {transform_indices = @transform_1, window_bounds = array<i64: 8, 18>}, {pipeline_mode = #tpu.pipeline_mode<synchronous>, transform_indices = @transform_2, window_bounds = array<i64: 32, 4>}, {pipeline_mode = #tpu.pipeline_mode<synchronous>, transform_indices = @transform_3, window_bounds = array<i64: 32, 8>}, {pipeline_mode = #tpu.pipeline_mode<synchronous>, transform_indices = @transform_4, window_bounds = array<i64: 32, 1>}, {pipeline_mode = #tpu.pipeline_mode<synchronous>, transform_indices = @transform_5, window_bounds = array<i64: 32, 32>}, {pipeline_mode = #tpu.pipeline_mode<synchronous>, transform_indices = @transform_6, window_bounds = array<i64: 32, 1>}, {transform_indices = @transform_7, window_bounds = array<i64: 32, 18>}]} {
    %c0 = arith.constant 0 : index
    %c0_0 = arith.constant 0 : index
    %0 = vector.load %arg4[%c0, %c0_0] : memref<32x8xf32, #tpu.memory_space<vmem>>, vector<32x8xf32>
    %c0_1 = arith.constant 0 : index
    %c0_2 = arith.constant 0 : index
    %1 = vector.load %arg2[%c0_1, %c0_2] : memref<8x18xf32, #tpu.memory_space<vmem>>, vector<8x18xf32>
    %cst = arith.constant dense<0.000000e+00> : vector<32x18xf32>
    %2 = tpu.matmul %0, %1, %cst {dimension_numbers = #tpu.dot_dimension_numbers<[1], [0], [0], [1], [0, 0, 1, 1], [], []>} : vector<32x8xf32>, vector<8x18xf32>, vector<32x18xf32> -> vector<32x18xf32>
    %c0_3 = arith.constant 0 : index
    %c0_4 = arith.constant 0 : index
    %3 = vector.load %arg5[%c0_3, %c0_4] : memref<32x1xf32, #tpu.memory_space<vmem>>, vector<32x1xf32>
    %4 = vector.broadcast %3 : vector<32x1xf32> to vector<32x18xf32>
    %5 = arith.addf %2, %4 : vector<32x18xf32>
    %cst_5 = arith.constant 0.000000e+00 : f32
    %6 = vector.broadcast %cst_5 : f32 to vector<32x18xf32>
    %7 = arith.maximumf %5, %6 : vector<32x18xf32>
    %c0_6 = arith.constant 0 : index
    %c0_7 = arith.constant 0 : index
    %8 = vector.load %arg6[%c0_6, %c0_7] : memref<32x32xf32, #tpu.memory_space<vmem>>, vector<32x32xf32>
    %cst_8 = arith.constant dense<0.000000e+00> : vector<32x18xf32>
    %9 = tpu.matmul %8, %7, %cst_8 {dimension_numbers = #tpu.dot_dimension_numbers<[1], [0], [0], [1], [0, 0, 1, 1], [], []>} : vector<32x32xf32>, vector<32x18xf32>, vector<32x18xf32> -> vector<32x18xf32>
    %c0_9 = arith.constant 0 : index
    %c0_10 = arith.constant 0 : index
    %10 = vector.load %arg7[%c0_9, %c0_10] : memref<32x1xf32, #tpu.memory_space<vmem>>, vector<32x1xf32>
    %11 = vector.broadcast %10 : vector<32x1xf32> to vector<32x18xf32>
    %12 = arith.addf %9, %11 : vector<32x18xf32>
    %c0_11 = arith.constant 0 : index
    %c0_12 = arith.constant 0 : index
    %13 = vector.load %arg1[%c0_11, %c0_12] : memref<1x18xi32, #tpu.memory_space<vmem>>, vector<1x18xi32>
    %c0_13 = arith.constant 0 : index
    %c0_14 = arith.constant 0 : index
    %14 = vector.load %arg3[%c0_13, %c0_14] : memref<32x4xf32, #tpu.memory_space<vmem>>, vector<32x4xf32>
    %cst_15 = arith.constant 0.000000e+00 : f32
    %15 = vector.broadcast %cst_15 : f32 to vector<32x18xf32>
    %c0_i32 = arith.constant 0 : i32
    %16 = vector.broadcast %c0_i32 : i32 to vector<1x18xi32>
    %17 = arith.cmpi eq, %13, %16 : vector<1x18xi32>
    %18 = vector.extract_strided_slice %14 {offsets = [0, 0], sizes = [32, 1], strides = [1, 1]} : vector<32x4xf32> to vector<32x1xf32>
    %19 = vector.shape_cast %17 : vector<1x18xi1> to vector<1x18xi1>
    %20 = vector.broadcast %19 : vector<1x18xi1> to vector<32x18xi1>
    %21 = vector.shape_cast %18 : vector<32x1xf32> to vector<32x1xf32>
    %22 = vector.broadcast %21 : vector<32x1xf32> to vector<32x18xf32>
    %23 = arith.select %20, %22, %15 : vector<32x18xi1>, vector<32x18xf32>
    %c1_i32 = arith.constant 1 : i32
    %24 = vector.broadcast %c1_i32 : i32 to vector<1x18xi32>
    %25 = arith.cmpi eq, %13, %24 : vector<1x18xi32>
    %26 = vector.extract_strided_slice %14 {offsets = [0, 1], sizes = [32, 1], strides = [1, 1]} : vector<32x4xf32> to vector<32x1xf32>
    %27 = vector.shape_cast %25 : vector<1x18xi1> to vector<1x18xi1>
    %28 = vector.broadcast %27 : vector<1x18xi1> to vector<32x18xi1>
    %29 = vector.shape_cast %26 : vector<32x1xf32> to vector<32x1xf32>
    %30 = vector.broadcast %29 : vector<32x1xf32> to vector<32x18xf32>
    %31 = arith.select %28, %30, %23 : vector<32x18xi1>, vector<32x18xf32>
    %c2_i32 = arith.constant 2 : i32
    %32 = vector.broadcast %c2_i32 : i32 to vector<1x18xi32>
    %33 = arith.cmpi eq, %13, %32 : vector<1x18xi32>
    %34 = vector.extract_strided_slice %14 {offsets = [0, 2], sizes = [32, 1], strides = [1, 1]} : vector<32x4xf32> to vector<32x1xf32>
    %35 = vector.shape_cast %33 : vector<1x18xi1> to vector<1x18xi1>
    %36 = vector.broadcast %35 : vector<1x18xi1> to vector<32x18xi1>
    %37 = vector.shape_cast %34 : vector<32x1xf32> to vector<32x1xf32>
    %38 = vector.broadcast %37 : vector<32x1xf32> to vector<32x18xf32>
    %39 = arith.select %36, %38, %31 : vector<32x18xi1>, vector<32x18xf32>
    %c3_i32 = arith.constant 3 : i32
    %40 = vector.broadcast %c3_i32 : i32 to vector<1x18xi32>
    %41 = arith.cmpi eq, %13, %40 : vector<1x18xi32>
    %42 = vector.extract_strided_slice %14 {offsets = [0, 3], sizes = [32, 1], strides = [1, 1]} : vector<32x4xf32> to vector<32x1xf32>
    %43 = vector.shape_cast %41 : vector<1x18xi1> to vector<1x18xi1>
    %44 = vector.broadcast %43 : vector<1x18xi1> to vector<32x18xi1>
    %45 = vector.shape_cast %42 : vector<32x1xf32> to vector<32x1xf32>
    %46 = vector.broadcast %45 : vector<32x1xf32> to vector<32x18xf32>
    %47 = arith.select %44, %46, %39 : vector<32x18xi1>, vector<32x18xf32>
    %48 = arith.addf %12, %47 : vector<32x18xf32>
    %c0_16 = arith.constant 0 : index
    %c0_17 = arith.constant 0 : index
    %49 = vector.load %arg8[%c0_16, %c0_17] : memref<32x18xf32, #tpu.memory_space<vmem>>, vector<32x18xf32>
    tpu.vector_store %arg8[%c0_16, %c0_17], %48 {strides = array<i32>} : memref<32x18xf32, #tpu.memory_space<vmem>>, vector<32x18xf32>,
    return
  }
  func.func @transform_0(%arg0: i32) -> (i32, i32) {
    %c0_i32 = arith.constant 0 : i32
    %c0_i32_0 = arith.constant 0 : i32
    return %c0_i32, %arg0 : i32, i32
  }
  func.func @transform_1(%arg0: i32) -> (i32, i32) {
    %c0_i32 = arith.constant 0 : i32
    %c0_i32_0 = arith.constant 0 : i32
    return %c0_i32, %arg0 : i32, i32
  }
  func.func @transform_2(%arg0: i32) -> (i32, i32) {
    %c0_i32 = arith.constant 0 : i32
    %c0_i32_0 = arith.constant 0 : i32
    %c0_i32_1 = arith.constant 0 : i32
    return %c0_i32, %c0_i32_0 : i32, i32
  }
  func.func @transform_3(%arg0: i32) -> (i32, i32) {
    %c0_i32 = arith.constant 0 : i32
    %c0_i32_0 = arith.constant 0 : i32
    %c0_i32_1 = arith.constant 0 : i32
    return %c0_i32, %c0_i32_0 : i32, i32
  }
  func.func @transform_4(%arg0: i32) -> (i32, i32) {
    %c0_i32 = arith.constant 0 : i32
    %c0_i32_0 = arith.constant 0 : i32
    %c0_i32_1 = arith.constant 0 : i32
    return %c0_i32, %c0_i32_0 : i32, i32
  }
  func.func @transform_5(%arg0: i32) -> (i32, i32) {
    %c0_i32 = arith.constant 0 : i32
    %c0_i32_0 = arith.constant 0 : i32
    %c0_i32_1 = arith.constant 0 : i32
    return %c0_i32, %c0_i32_0 : i32, i32
  }
  func.func @transform_6(%arg0: i32) -> (i32, i32) {
    %c0_i32 = arith.constant 0 : i32
    %c0_i32_0 = arith.constant 0 : i32
    %c0_i32_1 = arith.constant 0 : i32
    return %c0_i32, %c0_i32_0 : i32, i32
  }
  func.func @transform_7(%arg0: i32) -> (i32, i32) {
    %c0_i32 = arith.constant 0 : i32
    %c0_i32_0 = arith.constant 0 : i32
    return %c0_i32, %arg0 : i32, i32
  }
}

</mosaic_0001>

<bundles_post_ra>
// kernel: context_embedding.1
= control target key start
LH: loop header
LB: loop body
LE: loop exit
PB: predicated region body
PF: predicated region fallthrough
CT: control target
= control target key end

     0   :  { %vm55_vm0 = vcmask 64512   ;;  %v481_v3 = vmov 0   ;;  %v482_v13 = vmov 1   ;;  %v483_v19 = vmov 2   ;;  %s630_s1 = inlined_call_operand.vmem [shape: f32[8,18], index: 1, kind: input, shape index: {}]   ;;  %s631_s3 = inlined_call_operand.vmem [shape: f32[32,8], index: 3, kind: input, shape index: {}]   ;;  %s632_s4 = inlined_call_operand.vmem [shape: f32[32,1], index: 4, kind: input, shape index: {}]   ;;  %s633_s6 = inlined_call_operand.vmem [shape: f32[32,1], index: 6, kind: input, shape index: {}]   ;;  %s634_s2 = inlined_call_operand.vmem [shape: f32[32,4], index: 2, kind: input, shape index: {}]   ;;  %s635_s5 = inlined_call_operand.vmem [shape: f32[32,32], index: 5, kind: input, shape index: {}]   ;;  %s636_s0 = inlined_call_operand.vmem [shape: s32[1,18], index: 0, kind: input, shape index: {}]   ;;  %s637_s7 = inlined_call_operand.vmem [shape: f32[32,18], index: 7, kind: output, shape index: {}]  }
   0x1   :  { %v30_v0 = vld [vmem:[%s630_s1] sm:$0xff]  ;;  %v27_v2 = vld [vmem:[%s631_s3 + $0x8] sm:$0xff]  ;;  %473 = vset.pattern.permute.xlu1 %v481_v3  ;;  %472 = vset.pattern.permute.xlu0 %v481_v3  ;;  %v28_v4 = vld [vmem:[%s631_s3 + $0x10] sm:$0xff]  ;;  %v484_v20 = vmov 3   ;;  %vm185_vm1 = vcmask 261120   ;;  %v290_v53 = vlaneseq  ;;  %vm404_vm10 = vcmask 146432  }
   0x2   :  { %v26_v1 = vld [vmem:[%s631_s3] sm:$0xff]  ;;  %434 = vmatprep.subr.mxu0 %v30_v0  ;;  %v33_v5 = vld [vmem:[%s632_s4 + $0x10] sm:$0xff]  ;;  %v34_v6 = vld [vmem:[%s632_s4 + $0x18] sm:$0xff] }
   0x3   :  { %436 = vmatprep.mubr.msk.f32.mxu0 %vm55_vm0, %v26_v1  ;;  %435 = vmatpush3.msra.mxu0 %v30_v0  ;;  %v31_v7 = vld [vmem:[%s632_s4] sm:$0xff]  ;;  %v29_v8 = vld [vmem:[%s631_s3 + $0x18] sm:$0xff]  ;;  %v32_v9 = vld [vmem:[%s632_s4 + $0x8] sm:$0xff]  ;;  %v291_v57 = vshrl.u32 %v290_v53, 7 }
   0x4   :  { %47 = vperm.xlu1 %473, %v33_v5   ;;  %437 = vmatmul.mubr.msk.f32.vlgmr.msra.gmra.mrb[0].mxu0 %vm55_vm0, %v27_v2  ;;  %v162_v10 = vld [vmem:[%s633_s6 + $0x8] sm:$0xff]  ;;  %v284_v12 = vld [vmem:[%s634_s2] sm:$0xff]  ;;  %v286_v14 = vld [vmem:[%s634_s2 + $0x10] sm:$0xff] }
   0x5   :  { %439 = vmatprep.mubr.msk.f32.mxu0 %vm55_vm0, %v28_v4  ;;  %37 = vperm.xlu0 %472, %v31_v7   ;;  %v285_v11 = vld [vmem:[%s634_s2 + $0x8] sm:$0xff]  ;;  %v161_v15 = vld [vmem:[%s633_s6] sm:$0xff]  ;;  %v163_v16 = vld [vmem:[%s633_s6 + $0x10] sm:$0xff]  ;;  %v292_v59 = vsub.s32 0, %v291_v57 }
   0x6   :  { %v287_v17 = vld [vmem:[%s634_s2 + $0x18] sm:$0xff]  ;;  %v157_v21 = vld [vmem:[%s635_s5] sm:$0xff]  ;;  %v159_v22 = vld [vmem:[%s635_s5 + $0x10] sm:$0xff] }
   0x7   :  { %v164_v18 = vld [vmem:[%s633_s6 + $0x18] sm:$0xff]  ;;  %453 = vmatprep.mubr.msk.f32.mxu1 %vm185_vm1, %v159_v22  ;;  %v158_v41 = vld [vmem:[%s635_s5 + $0x8] sm:$0xff]  ;;  %v283_v56 = vld [vmem:[%s636_s0] sm:$0x1] }
   0x8   :  { %52 = vperm.xlu1 %473, %v34_v6   ;;  %440 = vmatmul.mubr.msk.f32.gmra.mrb[2].mxu0 %vm55_vm0, %v29_v8  ;;  %v160_v42 = vld [vmem:[%s635_s5 + $0x18] sm:$0xff]  ;;  %vm288_vm2 = vcmp.eq.s32.totalorder %v283_v56, 0  ;;  %vm319_vm3 = vcmp.eq.s32.totalorder %v283_v56, 1  ;;  %vm346_vm4 = vcmp.eq.s32.totalorder %v283_v56, 2  ;;  %vm373_vm5 = vcmp.eq.s32.totalorder %v283_v56, 3 }
   0x9   :  { %42 = vperm.xlu0 %472, %v32_v9   ;;  %450 = vmatprep.mubr.msk.f32.mxu0 %vm185_vm1, %v157_v21  ;;  %v289_v61 = vsel %vm288_vm2, 1, %v481_v3  ;;  %v320_v63 = vsel %vm319_vm3, 1, %v481_v3  ;;  %v347_v4 = vsel %vm346_vm4, 1, %v481_v3  ;;  %v374_v8 = vsel %vm373_vm5, 1, %v481_v3 }
   0xa   :  { %v293_v62 = vrot.slane %v289_v61, %v292_v59  ;;  %v324_v2 = vrot.slane %v320_v63, %v292_v59  ;;  %v351_v6 = vrot.slane %v347_v4, %v292_v59 }
   0xc   :  { %172 = vperm.xlu1 %473, %v162_v10   ;;  %vm294_vm6 = vcmp.eq.s32.totalorder %v293_v62, 1  ;;  %vm325_vm7 = vcmp.eq.s32.totalorder %v324_v2, 1  ;;  %vm606_vm8 = vcmp.eq.s32.totalorder %v351_v6, 1 }
   0xd   :  { %475 = vset.pattern.permute.xlu0 %v482_v13 }
   0xe   :  { %331 = vperm.xlu0 %475, %v285_v11  }
  0x10   :  { %297 = vperm.xlu1 %473, %v284_v12  }
  0x12   :  { %476 = vset.pattern.permute.xlu0 %v481_v3 }
  0x13   :  { %167 = vperm.xlu0 %476, %v161_v15   ;;  %v378_v15 = vrot.slane %v374_v8, %v292_v59 }
  0x14   :  { %307 = vperm.xlu1 %473, %v286_v14  }
  0x15   :  { %vm379_vm9 = vcmp.eq.s32.totalorder %v378_v15, 1 }
  0x17   :  { %177 = vperm.xlu0 %476, %v163_v16  }
  0x18   :  { %474 = vset.pattern.permute.xlu1 %v482_v13 }
  0x19   :  { %327 = vperm.xlu1 %474, %v284_v12  }
  0x1b   :  { %302 = vperm.xlu0 %476, %v285_v11  }
  0x1d   :  { %335 = vperm.xlu1 %474, %v286_v14  }
  0x1f   :  { %312 = vperm.xlu0 %476, %v287_v17  }
  0x21   :  { %339 = vperm.xlu1 %474, %v287_v17  }
  0x23   :  { %182 = vperm.xlu0 %476, %v164_v18  }
  0x25   :  { %477 = vset.pattern.permute.xlu1 %v483_v19 }
  0x26   :  { %354 = vperm.xlu1 %477, %v284_v12  }
  0x27   :  { %478 = vset.pattern.permute.xlu0 %v483_v19 }
  0x28   :  { %362 = vperm.xlu0 %478, %v286_v14  }
  0x2a   :  { %358 = vperm.xlu1 %477, %v285_v11  }
  0x2c   :  { %480 = vset.pattern.permute.xlu0 %v484_v20 }
  0x2d   :  { %385 = vperm.xlu0 %480, %v285_v11  }
  0x2e   :  { %366 = vperm.xlu1 %477, %v287_v17  }
  0x32   :  { %479 = vset.pattern.permute.xlu1 %v484_v20 }
  0x33   :  { %381 = vperm.xlu1 %479, %v284_v12  }
  0x37   :  { %389 = vperm.xlu1 %479, %v286_v14  }
  0x3b   :  { %393 = vperm.xlu1 %479, %v287_v17  }
  0x83   :  { %v48_v24 = vpop.permute.xlu1 %47 }
  0x84   :  { %v38_v23 = vpop.permute.xlu0 %37 }
  0x87   :  { %v53_v31 = vpop.permute.xlu1 %52 }
  0x88   :  { %v43_v25 = vpop.permute.xlu0 %42 }
  0x8b   :  { %v173_v43 = vpop.permute.xlu1 %172 }
  0x8d   :  { %v332_v47 = vpop.permute.xlu0 %331 }
  0x8f   :  { %v298_v44 = vpop.permute.xlu1 %297 }
  0x90   :  { %v315_v9 = vsel %vm294_vm6, %v298_v44, 0.0 }
  0x92   :  { %v168_v49 = vpop.permute.xlu0 %167 }
  0x93   :  { %v308_v45 = vpop.permute.xlu1 %307 }
  0x94   :  { %v317_v10 = vsel %vm294_vm6, %v308_v45, 0.0 }
  0x96   :  { %v178_v51 = vpop.permute.xlu0 %177 }
  0x98   :  { %v328_v46 = vpop.permute.xlu1 %327 }
  0x99   :  { %v342_v16 = vsel %vm325_vm7, %v328_v46, %v315_v9 }
  0x9a   :  { %v303_v54 = vpop.permute.xlu0 %302 }
  0x9b   :  { %v316_v5 = vsel %vm294_vm6, %v303_v54, 0.0 }
  0x9c   :  { %v336_v48 = vpop.permute.xlu1 %335  ;;  %v343_v12 = vsel %vm325_vm7, %v332_v47, %v316_v5 }
  0x9d   :  { %v344_v17 = vsel %vm325_vm7, %v336_v48, %v317_v10 }
  0x9e   :  { %v313_v58 = vpop.permute.xlu0 %312 }
  0x9f   :  { %v318_v7 = vsel %vm294_vm6, %v313_v58, 0.0 }
  0xa0   :  { %v340_v50 = vpop.permute.xlu1 %339 }
  0xa1   :  { %v345_v14 = vsel %vm325_vm7, %v340_v50, %v318_v7 }
  0xa2   :  { %v183_v0 = vpop.permute.xlu0 %182 }
  0xa5   :  { %v355_v52 = vpop.permute.xlu1 %354 }
  0xa6   :  { %v369_v22 = vsel %vm606_vm8, %v355_v52, %v342_v16 }
  0xa7   :  { %v363_v11 = vpop.permute.xlu0 %362 }
  0xa9   :  { %v359_v55 = vpop.permute.xlu1 %358 }
  0xaa   :  { %v370_v19 = vsel %vm606_vm8, %v359_v55, %v343_v12 }
  0xac   :  { %v386_v20 = vpop.permute.xlu0 %385 }
  0xad   :  { %v367_v60 = vpop.permute.xlu1 %366 }
  0xae   :  { %v372_v3 = vsel %vm606_vm8, %v367_v60, %v345_v14 }
  0xb2   :  { %v382_v1 = vpop.permute.xlu1 %381 }
  0xb6   :  { %v390_v13 = vpop.permute.xlu1 %389 }
  0xba   :  { %v394_v21 = vpop.permute.xlu1 %393 }
  0xd7   :  { %v438_v26 = vpop.f32.mrb[0].mxu0 }
  0xd8   :  { %v140_v27 = vadd.f32 %v438_v26, %v43_v25  ;;  %v134_v28 = vpop.f32.mrb[1].mxu0  ;;  %v397_v26 = vsel %vm379_vm9, %v386_v20, %v370_v19 }
  0xd9   :  { %v135_v29 = vadd.f32 %v134_v28, %v38_v23  ;;  %v371_v23 = vsel %vm606_vm8, %v363_v11, %v344_v17 }
  0xda   :  { %v154_v30 = vmax.f32 %v140_v27, 0.0 }
  0xdb   :  { %v153_v32 = vmax.f32 %v135_v29, 0.0  ;;  %v441_v33 = vpop.f32.mrb[2].mxu0 }
  0xdc   :  { %v150_v34 = vadd.f32 %v441_v33, %v53_v31  ;;  %v144_v35 = vpop.f32.mrb[3].mxu0  ;;  %v399_v31 = vsel %vm379_vm9, %v394_v21, %v372_v3 }
  0xdd   :  { %v456_v36 = vpack.c.bf16 %v154_v30, %v153_v32  ;;  %v145_v37 = vadd.f32 %v144_v35, %v48_v24  ;;  %v398_v35 = vsel %vm379_vm9, %v390_v13, %v371_v23 }
  0xde   :  { %v156_v38 = vmax.f32 %v150_v34, 0.0  ;;  %v396_v34 = vsel %vm379_vm9, %v382_v1, %v369_v22 }
  0xdf   :  { %v155_v39 = vmax.f32 %v145_v37, 0.0  ;;  %457 = vmatprep.subr.bf16.mxu0 %v456_v36  ;;  %464 = vmatprep.subr.bf16.mxu1 %v456_v36 }
  0xe0   :  { %459 = vmatpush3.bf16.msra.mxu0 %v456_v36  ;;  %466 = vmatpush3.bf16.msra.mxu1 %v456_v36 }
  0xe1   :  { %v460_v40 = vpack.c.bf16 %v156_v38, %v155_v39 }
  0xe3   :  { %461 = vmatprep.subr.bf16.mxu0 %v460_v40  ;;  %465 = vmatprep.subr.bf16.mxu1 %v460_v40 }
  0xe4   :  { %463 = vmatpush3.bf16.msra.mxu0 %v460_v40  ;;  %467 = vmatpush3.bf16.msra.mxu1 %v460_v40 }
  0xe7   :  { %451 = vmatmul.mubr.msk.f32.vlgmr.msra.gmra.mrb[4].mxu0 %vm185_vm1, %v158_v41  ;;  %454 = vmatmul.mubr.msk.f32.vlgmr.msra.gmra.mrb[0].mxu1 %vm185_vm1, %v160_v42 }
 0x1ba   :  { %v452_v24 = vpop.f32.mrb[4].mxu0  ;;  %v455_v25 = vpop.f32.mrb[0].mxu1 }
 0x1bb   :  { %v270_v27 = vadd.f32 %v452_v24, %v173_v43  ;;  %v280_v28 = vadd.f32 %v455_v25, %v183_v0  ;;  %v264_v29 = vpop.f32.mrb[5].mxu0  ;;  %v274_v30 = vpop.f32.mrb[1].mxu1 }
 0x1bc   :  { %v265_v32 = vadd.f32 %v264_v29, %v168_v49  ;;  %v275_v33 = vadd.f32 %v274_v30, %v178_v51 }
 0x1bd   :  { %v401_v36 = vadd.f32 %v397_v26, %v270_v27  ;;  %v403_v37 = vadd.f32 %v399_v31, %v280_v28 }
 0x1be   :  { %v400_v38 = vadd.f32 %v396_v34, %v265_v32  ;;  %v402_v39 = vadd.f32 %v398_v35, %v275_v33 }
 0x1bf   :  { %406 = vst.msk [vmem:[%s637_s7 + $0x8] sm:$0xff] %vm404_vm10, %v401_v36  ;;  %408 = vst.msk [vmem:[%s637_s7 + $0x18] sm:$0xff] %vm404_vm10, %v403_v37 }
 0x1c0   :  { %405 = vst.msk [vmem:[%s637_s7] sm:$0xff] %vm404_vm10, %v400_v38  ;;  %407 = vst.msk [vmem:[%s637_s7 + $0x10] sm:$0xff] %vm404_vm10, %v402_v39 }

</bundles_post_ra>
